<compile_context>
chip_gen: v7x
topology: tpu7x:2x2x1
jax: 0.10.0
libtpu: 0.0.40
codegen_flags: <defaults>
</compile_context>

<pallas_src>
import functools

import jax
import jax.numpy as jnp
from jax.experimental import pallas as pl
from jax.experimental.pallas import tpu as pltpu

EMBED_DIM = 32
DENSE_DIM = 32
NUM_HEADS = 4
HEAD_DIM = EMBED_DIM // NUM_HEADS
LN_EPS = 1e-5  # PyTorch nn.LayerNorm default


def _layernorm(x, gamma, beta):
    mean = jnp.mean(x, axis=-1, keepdims=True)
    var = jnp.mean((x - mean) ** 2, axis=-1, keepdims=True)
    return (x - mean) * jax.lax.rsqrt(var + LN_EPS) * gamma + beta


def transformer_encoder_kernel(
    x_ref,      # (T, E)   T = S*B tokens, row t = (s, b) with b = t % B
    mask_ref,   # (T, T)   additive same-batch mask: 0 (same batch) / -1e30
    wqkv_ref,   # (E, 3E)  in_proj.weight.T, 1/sqrt(Dh) folded into Q columns
    bqkv_ref,   # (1, 3E)  in_proj bias (Q part pre-scaled)
    wo_ref,     # (E, E)   out_proj.weight.T
    wff_ref,    # (E, E)   fused dense1->dense2 weight (no activation in spec)
    vecs_ref,   # (6, E)   rows: [out_proj bias, ln1_g, ln1_b, b_ff, ln2_g, ln2_b]
    out_ref,    # (T, E)
):
    T, E = x_ref.shape
    H, Dh = NUM_HEADS, HEAD_DIM

    x = x_ref[...].astype(jnp.float32)                                     # (T, E)
    vecs = vecs_ref[...].astype(jnp.float32)
    bo, ln1_g, ln1_b, b_ff, ln2_g, ln2_b = (vecs[i:i + 1, :] for i in range(6))

    # ------------- multi-head self-attention: single fused QKV matmul -------------
    qkv = jnp.dot(x, wqkv_ref[...],
                  preferred_element_type=jnp.float32) + bqkv_ref[...]      # (T, 3E)

    def heads(z):  # (T, H*Dh) -> (H, T, Dh)
        return jnp.transpose(z.reshape(T, H, Dh), (1, 0, 2))

    q = heads(qkv[:, 0:E])          # already scaled by 1/sqrt(Dh) via the weights
    k = heads(qkv[:, E:2 * E])
    v = heads(qkv[:, 2 * E:3 * E])

    # All S*B tokens attend jointly; the additive same-batch mask makes this
    # exactly equivalent to independent per-batch attention.
    scores = jnp.einsum("hqd,hkd->hqk", q, k,
                        preferred_element_type=jnp.float32)                # (H, T, T)
    scores = scores + mask_ref[...][None, :, :]
    scores = scores - jnp.max(scores, axis=-1, keepdims=True)
    e = jnp.exp(scores)
    denom = jnp.sum(e, axis=-1, keepdims=True)
    r = pl.reciprocal(denom, approx=True)
    r = r * (2.0 - denom * r)                    # one Newton-Raphson refinement step
    p = e * r
    ctx = jnp.einsum("hqk,hkd->hqd", p, v,
                     preferred_element_type=jnp.float32)                   # (H, T, Dh)

    # concat heads -> (T, E), then a single out-projection matmul
    ctx_te = jnp.transpose(ctx, (1, 0, 2)).reshape(T, E)
    attn = jnp.dot(ctx_te, wo_ref[...],
                   preferred_element_type=jnp.float32) + bo                # (T, E)

    # dropout1: identity at inference
    out1 = _layernorm(x + attn, ln1_g, ln1_b)

    # ----- feed-forward: dense2(dense1(x)) has no activation -> fused matmul -----
    ff = jnp.dot(out1, wff_ref[...], preferred_element_type=jnp.float32) + b_ff
    # dropout2: identity at inference
    out2 = _layernorm(out1 + ff, ln2_g, ln2_b)

    out_ref[...] = out2.astype(out_ref.dtype)


def init_params(key, embed_dim=EMBED_DIM, dense_dim=DENSE_DIM):
    """Deterministic synthetic parameters in PyTorch layout."""
    E, D = embed_dim, dense_dim
    ks = jax.random.split(key, 12)
    s = 0.05
    return {
        "in_proj_weight": jax.random.normal(ks[0], (3 * E, E), jnp.float32) * s,
        "in_proj_bias": jax.random.normal(ks[1], (3 * E,), jnp.float32) * s,
        "out_proj_weight": jax.random.normal(ks[2], (E, E), jnp.float32) * s,
        "out_proj_bias": jax.random.normal(ks[3], (E,), jnp.float32) * s,
        "ln1_gamma": 1.0 + 0.1 * jax.random.normal(ks[4], (E,), jnp.float32),
        "ln1_beta": 0.1 * jax.random.normal(ks[5], (E,), jnp.float32),
        "w1": jax.random.normal(ks[6], (D, E), jnp.float32) * s,   # dense1.weight (out, in)
        "b1": jax.random.normal(ks[7], (D,), jnp.float32) * s,
        "w2": jax.random.normal(ks[8], (E, D), jnp.float32) * s,   # dense2.weight (out, in)
        "b2": jax.random.normal(ks[9], (E,), jnp.float32) * s,
        "ln2_gamma": 1.0 + 0.1 * jax.random.normal(ks[10], (E,), jnp.float32),
        "ln2_beta": 0.1 * jax.random.normal(ks[11], (E,), jnp.float32),
    }


def prepare_kernel_params(p):
    """One-time host-side repack of PyTorch-layout params into flat 2-D kernel tiles."""
    E, Dh = EMBED_DIM, HEAD_DIM
    scale = 1.0 / (Dh ** 0.5)

    # Fold the 1/sqrt(Dh) softmax scale into the Q rows of in_proj weight & bias.
    w_in = p["in_proj_weight"].at[0:E].multiply(scale)          # (3E, E)
    b_in = p["in_proj_bias"].at[0:E].multiply(scale)            # (3E,)
    w_qkv = w_in.T                                              # (E, 3E) contiguous tile
    b_qkv = b_in.reshape(1, 3 * E)                              # (1, 3E)

    w_o = p["out_proj_weight"].T                                # (E, E)

    # Fused FFN (exact: the spec module has no activation between dense1 and dense2).
    w_ff = p["w1"].T @ p["w2"].T                                # (E, E)
    b_ff = p["b1"] @ p["w2"].T + p["b2"]                        # (E,)

    vecs = jnp.stack([p["out_proj_bias"], p["ln1_gamma"], p["ln1_beta"],
                      b_ff, p["ln2_gamma"], p["ln2_beta"]], axis=0)   # (6, E)
    return {"w_qkv": w_qkv, "b_qkv": b_qkv, "w_o": w_o, "w_ff": w_ff, "vecs": vecs}


@jax.jit
def transformer_encoder(x_sbe, kp):
    """x_sbe: (S, B, E) like the PyTorch module (batch_first=False); returns (S, B, E)."""
    S, B, E = x_sbe.shape
    T = S * B
    x_tok = x_sbe.reshape(T, E)   # free row-major reshape; NO transposes

    # Additive same-batch mask (constant-folded by XLA at compile time): under the
    # row-major (S,B,E)->(T,E) reshape, token t belongs to batch t % B.
    row_b = jax.lax.broadcasted_iota(jnp.int32, (T, T), 0) % B
    col_b = jax.lax.broadcasted_iota(jnp.int32, (T, T), 1) % B
    mask = jnp.where(row_b == col_b, 0.0, -1e30).astype(jnp.float32)

    vmem = pltpu.MemorySpace.VMEM
    out_tok = pl.pallas_call(
        transformer_encoder_kernel,
        out_shape=jax.ShapeDtypeStruct((T, E), x_sbe.dtype),
        in_specs=[pl.BlockSpec(memory_space=vmem)] * 7,
        out_specs=pl.BlockSpec(memory_space=vmem),
    )(x_tok, mask, kp["w_qkv"], kp["b_qkv"], kp["w_o"], kp["w_ff"], kp["vecs"])
    return out_tok.reshape(S, B, E)


def _reference(x_sbe, p):
    """Pure-JAX reference matching the PyTorch forward (inference mode)."""
    H, Dh = NUM_HEADS, HEAD_DIM

    def per_batch(x):  # x: (S, E)
        qkv = x @ p["in_proj_weight"].T + p["in_proj_bias"]
        q, k, v = jnp.split(qkv, 3, axis=-1)
        outs = []
        for h in range(H):
            sl = slice(h * Dh, (h + 1) * Dh)
            sc = (q[:, sl] * (1.0 / (Dh ** 0.5))) @ k[:, sl].T
            pr = jax.nn.softmax(sc, axis=-1)
            outs.append(pr @ v[:, sl])
        attn = jnp.concatenate(outs, axis=-1) @ p["out_proj_weight"].T + p["out_proj_bias"]
        out1 = _layernorm(x + attn, p["ln1_gamma"], p["ln1_beta"])
        d = (out1 @ p["w1"].T + p["b1"]) @ p["w2"].T + p["b2"]
        return _layernorm(out1 + d, p["ln2_gamma"], p["ln2_beta"])

    out_bse = jax.vmap(per_batch)(jnp.transpose(x_sbe, (1, 0, 2)))
    return jnp.transpose(out_bse, (1, 0, 2))


if __name__ == "__main__":
    key = jax.random.PRNGKey(0)
    k_param, k_x = jax.random.split(key)

    S, B, E = 8, 2, EMBED_DIM  # (seq, batch, embed) — PyTorch MHA default layout
    params = init_params(k_param)
    kparams = prepare_kernel_params(params)
    x = jax.random.normal(k_x, (S, B, E), jnp.float32)

    out = jax.block_until_ready(transformer_encoder(x, kparams))

    ref = _reference(x, params)
    assert out.shape == (S, B, E)
    assert jnp.allclose(out, ref, atol=1e-4, rtol=1e-4), (
        f"mismatch vs JAX reference, max abs err = {jnp.max(jnp.abs(out - ref)):.3e}")

    print("KERNEL_OK")
</pallas_src>

<mosaic_0001>
module attributes {stable_mosaic.version = 11 : i64} {
  func.func @transformer_encoder_kernel(%arg0: memref<16x32xf32, #tpu.memory_space<vmem>>, %arg1: memref<16x16xf32, #tpu.memory_space<vmem>>, %arg2: memref<32x96xf32, #tpu.memory_space<vmem>>, %arg3: memref<1x96xf32, #tpu.memory_space<vmem>>, %arg4: memref<32x32xf32, #tpu.memory_space<vmem>>, %arg5: memref<32x32xf32, #tpu.memory_space<vmem>>, %arg6: memref<6x32xf32, #tpu.memory_space<vmem>>, %arg7: memref<16x32xf32, #tpu.memory_space<vmem>>) attributes {dimension_semantics = [], scalar_prefetch = 0 : i64, scratch_operands = 0 : i64, tpu.core_type = #tpu.core_type<tc>} {
    %c0 = arith.constant 0 : index
    %c0_0 = arith.constant 0 : index
    %0 = vector.load %arg0[%c0, %c0_0] : memref<16x32xf32, #tpu.memory_space<vmem>>, vector<16x32xf32>
    %c0_1 = arith.constant 0 : index
    %c0_2 = arith.constant 0 : index
    %1 = vector.load %arg6[%c0_1, %c0_2] : memref<6x32xf32, #tpu.memory_space<vmem>>, vector<6x32xf32>
    %2 = vector.extract_strided_slice %1 {offsets = [0, 0], sizes = [1, 32], strides = [1, 1]} : vector<6x32xf32> to vector<1x32xf32>
    %3 = vector.extract_strided_slice %1 {offsets = [1, 0], sizes = [1, 32], strides = [1, 1]} : vector<6x32xf32> to vector<1x32xf32>
    %4 = vector.extract_strided_slice %1 {offsets = [2, 0], sizes = [1, 32], strides = [1, 1]} : vector<6x32xf32> to vector<1x32xf32>
    %5 = vector.extract_strided_slice %1 {offsets = [3, 0], sizes = [1, 32], strides = [1, 1]} : vector<6x32xf32> to vector<1x32xf32>
    %6 = vector.extract_strided_slice %1 {offsets = [4, 0], sizes = [1, 32], strides = [1, 1]} : vector<6x32xf32> to vector<1x32xf32>
    %7 = vector.extract_strided_slice %1 {offsets = [5, 0], sizes = [1, 32], strides = [1, 1]} : vector<6x32xf32> to vector<1x32xf32>
    %c0_3 = arith.constant 0 : index
    %c0_4 = arith.constant 0 : index
    %8 = vector.load %arg2[%c0_3, %c0_4] : memref<32x96xf32, #tpu.memory_space<vmem>>, vector<32x96xf32>
    %cst = arith.constant dense<0.000000e+00> : vector<16x96xf32>
    %9 = tpu.matmul %0, %8, %cst {dimension_numbers = #tpu.dot_dimension_numbers<[1], [0], [0], [1], [0, 0, 1, 1], [], []>} : vector<16x32xf32>, vector<32x96xf32>, vector<16x96xf32> -> vector<16x96xf32>
    %c0_5 = arith.constant 0 : index
    %c0_6 = arith.constant 0 : index
    %10 = vector.load %arg3[%c0_5, %c0_6] : memref<1x96xf32, #tpu.memory_space<vmem>>, vector<1x96xf32>
    %11 = vector.broadcast %10 : vector<1x96xf32> to vector<16x96xf32>
    %12 = arith.addf %9, %11 : vector<16x96xf32>
    %13 = vector.extract_strided_slice %12 {offsets = [0, 0], sizes = [16, 32], strides = [1, 1]} : vector<16x96xf32> to vector<16x32xf32>
    %14 = vector.shape_cast %13 : vector<16x32xf32> to vector<16x4x8xf32>
    %15 = tpu.transpose %14, [1, 0, 2] : vector<16x4x8xf32> -> vector<4x16x8xf32>
    %16 = vector.extract_strided_slice %12 {offsets = [0, 32], sizes = [16, 32], strides = [1, 1]} : vector<16x96xf32> to vector<16x32xf32>
    %17 = vector.shape_cast %16 : vector<16x32xf32> to vector<16x4x8xf32>
    %18 = tpu.transpose %17, [1, 0, 2] : vector<16x4x8xf32> -> vector<4x16x8xf32>
    %19 = vector.extract_strided_slice %12 {offsets = [0, 64], sizes = [16, 32], strides = [1, 1]} : vector<16x96xf32> to vector<16x32xf32>
    %20 = vector.shape_cast %19 : vector<16x32xf32> to vector<16x4x8xf32>
    %21 = tpu.transpose %20, [1, 0, 2] : vector<16x4x8xf32> -> vector<4x16x8xf32>
    "tpu.trace_start"() <{level = 10 : i32, message = "hqd,hkd->hqk"}> : () -> ()
    %cst_7 = arith.constant dense<0.000000e+00> : vector<4x16x16xf32>
    %22 = tpu.matmul %15, %18, %cst_7 {dimension_numbers = #tpu.dot_dimension_numbers<[2], [2], [1], [1], [0, 0, 0, 1, 1, 1], [0], [0]>} : vector<4x16x8xf32>, vector<4x16x8xf32>, vector<4x16x16xf32> -> vector<4x16x16xf32>
    "tpu.trace_stop"() : () -> ()
    %c0_8 = arith.constant 0 : index
    %c0_9 = arith.constant 0 : index
    %23 = vector.load %arg1[%c0_8, %c0_9] : memref<16x16xf32, #tpu.memory_space<vmem>>, vector<16x16xf32>
    %24 = vector.shape_cast %23 : vector<16x16xf32> to vector<1x16x16xf32>
    %25 = vector.broadcast %24 : vector<1x16x16xf32> to vector<4x16x16xf32>
    %26 = arith.addf %22, %25 : vector<4x16x16xf32>
    %cst_10 = arith.constant dense<0xFF800000> : vector<4x16xf32>
    %27 = vector.multi_reduction <maximumf>, %26, %cst_10 [2] : vector<4x16x16xf32> to vector<4x16xf32>
    %28 = vector.shape_cast %27 : vector<4x16xf32> to vector<4x16x1xf32>
    %29 = vector.broadcast %28 : vector<4x16x1xf32> to vector<4x16x16xf32>
    %30 = arith.subf %26, %29 : vector<4x16x16xf32>
    %31 = math.exp %30 : vector<4x16x16xf32>
    %cst_11 = arith.constant dense<0.000000e+00> : vector<4x16xf32>
    %32 = vector.multi_reduction <add>, %31, %cst_11 [2] : vector<4x16x16xf32> to vector<4x16xf32>
    %33 = vector.shape_cast %32 : vector<4x16xf32> to vector<4x16x1xf32>
    %34 = tpu.reciprocal %33 {approx = true} : vector<4x16x1xf32> -> vector<4x16x1xf32>
    %35 = arith.mulf %33, %34 : vector<4x16x1xf32>
    %cst_12 = arith.constant 2.000000e+00 : f32
    %36 = vector.broadcast %cst_12 : f32 to vector<4x16x1xf32>
    %37 = arith.subf %36, %35 : vector<4x16x1xf32>
    %38 = arith.mulf %34, %37 : vector<4x16x1xf32>
    %39 = vector.broadcast %38 : vector<4x16x1xf32> to vector<4x16x16xf32>
    %40 = arith.mulf %31, %39 : vector<4x16x16xf32>
    "tpu.trace_start"() <{level = 10 : i32, message = "hqk,hkd->hqd"}> : () -> ()
    %cst_13 = arith.constant dense<0.000000e+00> : vector<4x16x8xf32>
    %41 = tpu.matmul %40, %21, %cst_13 {dimension_numbers = #tpu.dot_dimension_numbers<[2], [1], [1], [2], [0, 0, 0, 1, 1, 2], [0], [0]>} : vector<4x16x16xf32>, vector<4x16x8xf32>, vector<4x16x8xf32> -> vector<4x16x8xf32>
    "tpu.trace_stop"() : () -> ()
    %42 = tpu.transpose %41, [1, 0, 2] : vector<4x16x8xf32> -> vector<16x4x8xf32>
    %43 = vector.shape_cast %42 : vector<16x4x8xf32> to vector<16x32xf32>
    %c0_14 = arith.constant 0 : index
    %c0_15 = arith.constant 0 : index
    %44 = vector.load %arg4[%c0_14, %c0_15] : memref<32x32xf32, #tpu.memory_space<vmem>>, vector<32x32xf32>
    %cst_16 = arith.constant dense<0.000000e+00> : vector<16x32xf32>
    %45 = tpu.matmul %43, %44, %cst_16 {dimension_numbers = #tpu.dot_dimension_numbers<[1], [0], [0], [1], [0, 0, 1, 1], [], []>} : vector<16x32xf32>, vector<32x32xf32>, vector<16x32xf32> -> vector<16x32xf32>
    %46 = vector.broadcast %2 : vector<1x32xf32> to vector<16x32xf32>
    %47 = arith.addf %45, %46 : vector<16x32xf32>
    %48 = arith.addf %0, %47 : vector<16x32xf32>
    %cst_17 = arith.constant dense<0.000000e+00> : vector<16xf32>
    %49 = vector.multi_reduction <add>, %48, %cst_17 [1] : vector<16x32xf32> to vector<16xf32>
    %50 = vector.shape_cast %49 : vector<16xf32> to vector<16x1xf32>
    %cst_18 = arith.constant 3.200000e+01 : f32
    %51 = vector.broadcast %cst_18 : f32 to vector<16x1xf32>
    %52 = arith.divf %50, %51 : vector<16x1xf32>
    %53 = vector.broadcast %52 : vector<16x1xf32> to vector<16x32xf32>
    %54 = arith.subf %48, %53 : vector<16x32xf32>
    %55 = arith.mulf %54, %54 : vector<16x32xf32>
    %cst_19 = arith.constant dense<0.000000e+00> : vector<16xf32>
    %56 = vector.multi_reduction <add>, %55, %cst_19 [1] : vector<16x32xf32> to vector<16xf32>
    %57 = vector.shape_cast %56 : vector<16xf32> to vector<16x1xf32>
    %cst_20 = arith.constant 3.200000e+01 : f32
    %58 = vector.broadcast %cst_20 : f32 to vector<16x1xf32>
    %59 = arith.divf %57, %58 : vector<16x1xf32>
    %60 = vector.broadcast %52 : vector<16x1xf32> to vector<16x32xf32>
    %61 = arith.subf %48, %60 : vector<16x32xf32>
    %cst_21 = arith.constant 9.99999974E-6 : f32
    %62 = vector.broadcast %cst_21 : f32 to vector<16x1xf32>
    %63 = arith.addf %59, %62 : vector<16x1xf32>
    %64 = math.rsqrt %63 : vector<16x1xf32>
    %65 = vector.broadcast %64 : vector<16x1xf32> to vector<16x32xf32>
    %66 = arith.mulf %61, %65 : vector<16x32xf32>
    %67 = vector.broadcast %3 : vector<1x32xf32> to vector<16x32xf32>
    %68 = arith.mulf %66, %67 : vector<16x32xf32>
    %69 = vector.broadcast %4 : vector<1x32xf32> to vector<16x32xf32>
    %70 = arith.addf %68, %69 : vector<16x32xf32>
    %c0_22 = arith.constant 0 : index
    %c0_23 = arith.constant 0 : index
    %71 = vector.load %arg5[%c0_22, %c0_23] : memref<32x32xf32, #tpu.memory_space<vmem>>, vector<32x32xf32>
    %cst_24 = arith.constant dense<0.000000e+00> : vector<16x32xf32>
    %72 = tpu.matmul %70, %71, %cst_24 {dimension_numbers = #tpu.dot_dimension_numbers<[1], [0], [0], [1], [0, 0, 1, 1], [], []>} : vector<16x32xf32>, vector<32x32xf32>, vector<16x32xf32> -> vector<16x32xf32>
    %73 = vector.broadcast %5 : vector<1x32xf32> to vector<16x32xf32>
    %74 = arith.addf %72, %73 : vector<16x32xf32>
    %75 = arith.addf %70, %74 : vector<16x32xf32>
    %cst_25 = arith.constant dense<0.000000e+00> : vector<16xf32>
    %76 = vector.multi_reduction <add>, %75, %cst_25 [1] : vector<16x32xf32> to vector<16xf32>
    %77 = vector.shape_cast %76 : vector<16xf32> to vector<16x1xf32>
    %cst_26 = arith.constant 3.200000e+01 : f32
    %78 = vector.broadcast %cst_26 : f32 to vector<16x1xf32>
    %79 = arith.divf %77, %78 : vector<16x1xf32>
    %80 = vector.broadcast %79 : vector<16x1xf32> to vector<16x32xf32>
    %81 = arith.subf %75, %80 : vector<16x32xf32>
    %82 = arith.mulf %81, %81 : vector<16x32xf32>
    %cst_27 = arith.constant dense<0.000000e+00> : vector<16xf32>
    %83 = vector.multi_reduction <add>, %82, %cst_27 [1] : vector<16x32xf32> to vector<16xf32>
    %84 = vector.shape_cast %83 : vector<16xf32> to vector<16x1xf32>
    %cst_28 = arith.constant 3.200000e+01 : f32
    %85 = vector.broadcast %cst_28 : f32 to vector<16x1xf32>
    %86 = arith.divf %84, %85 : vector<16x1xf32>
    %87 = vector.broadcast %79 : vector<16x1xf32> to vector<16x32xf32>
    %88 = arith.subf %75, %87 : vector<16x32xf32>
    %cst_29 = arith.constant 9.99999974E-6 : f32
    %89 = vector.broadcast %cst_29 : f32 to vector<16x1xf32>
    %90 = arith.addf %86, %89 : vector<16x1xf32>
    %91 = math.rsqrt %90 : vector<16x1xf32>
    %92 = vector.broadcast %91 : vector<16x1xf32> to vector<16x32xf32>
    %93 = arith.mulf %88, %92 : vector<16x32xf32>
    %94 = vector.broadcast %6 : vector<1x32xf32> to vector<16x32xf32>
    %95 = arith.mulf %93, %94 : vector<16x32xf32>
    %96 = vector.broadcast %7 : vector<1x32xf32> to vector<16x32xf32>
    %97 = arith.addf %95, %96 : vector<16x32xf32>
    %c0_30 = arith.constant 0 : index
    %c0_31 = arith.constant 0 : index
    %98 = vector.load %arg7[%c0_30, %c0_31] : memref<16x32xf32, #tpu.memory_space<vmem>>, vector<16x32xf32>
    tpu.vector_store %arg7[%c0_30, %c0_31], %97 {strides = array<i32>} : memref<16x32xf32, #tpu.memory_space<vmem>>, vector<16x32xf32>,
    return
  }
}

</mosaic_0001>

<bundles_post_ra>
// kernel: transformer_encoder.1
= control target key start
LH: loop header
LB: loop body
LE: loop exit
PB: predicated region body
PF: predicated region fallthrough
CT: control target
= control target key end

     0   :  { %12 = vsyncpa [#allocation3], 0  ;;  %s3281_s0 = inlined_call_operand.vmem [shape: f32[16,32], index: 0, kind: input, shape index: {}]   ;;  %s3282_s1 = inlined_call_operand.vmem [shape: f32[16,16], index: 1, kind: input, shape index: {}]   ;;  %s3283_s2 = inlined_call_operand.vmem [shape: f32[32,96], index: 2, kind: input, shape index: {}]   ;;  %s3284_s3 = inlined_call_operand.vmem [shape: f32[1,96], index: 3, kind: input, shape index: {}]   ;;  %s3285_s4 = inlined_call_operand.hbm [shape: f32[32,32], index: 4, kind: input, shape index: {}]   ;;  %s3286_s5 = inlined_call_operand.hbm [shape: f32[32,32], index: 5, kind: input, shape index: {}]   ;;  %s3287_s6 = inlined_call_operand.vmem [shape: f32[6,32], index: 6, kind: input, shape index: {}]   ;;  %s3288_s7 = inlined_call_operand.hbm [shape: f32[16,32], index: 7, kind: output, shape index: {}]  }
   0x1   :  { %13 = vsyncpa [#allocation6], 0 }
   0x2   :  { %14 = vsyncpa [#allocation4], 0  ;;  %s2783_s24 = smov [#allocation2]   ;;  %s2711_s28 = scalar_lea.hbm %s3285_s4, 512 }
   0x3   :  { %s28_s25 = sshll.u32 %s2783_s24, 4  ;;  %p2712_p0 = scmp.ne.s32.totalorder %s3285_s4, %s2711_s28  ;;  %s29_s25 = int_to_ptr.vmem [resolvable:$true] %s28_s25 }
   0x4   :  { %p2715_p1 = scmp.lt.u32.totalorder %s2711_s28, %s3285_s4 }
   0x6   :  { %p2717_p2 = pnand %p2715_p1, %p2712_p0 }
   0x8   :  { %2720 = shalt.err (!%p2717_p2)
}
   0x9   :  { %s2721_s10 = scalar_lea.vmem %s29_s25, 512  ;;  %p2726_p4 = scmp.lt.s32.totalorder %s29_s25, %s29_s25 }
   0xa   :  { %p2722_p3 = scmp.ne.s32.totalorder %s29_s25, %s2721_s10  ;;  %p2727_p5 = scmp.lt.s32.totalorder %s2721_s10, %s2721_s10 }
   0xc   :  { %p2728_p6 = por %p2727_p5, %p2726_p4 }
   0xe   :  { %p2729_p7 = pnand %p2728_p6, %p2722_p3 }
  0x10   :  { %2732 = shalt.err (!%p2729_p7)
}
  0x11   :  { %s2784_s11 = smov 128   ;;  %s2785_s12 = smov 8  }
  0x12   :  { %34 = dma.hbm_to_vmem [thread:$0]  %s3285_s4, 512, %s29_s25, [#allocation3], %s2784_s11, %s2784_s11, %s2785_s12  }
  0x13   :  { %s2786_s15 = smov [#allocation5]   ;;  %s2733_s19 = scalar_lea.hbm %s3286_s5, 512 }
  0x14   :  { %s40_s16 = sshll.u32 %s2786_s15, 4  ;;  %p2734_p8 = scmp.ne.s32.totalorder %s3286_s5, %s2733_s19  ;;  %s41_s16 = int_to_ptr.vmem [resolvable:$true] %s40_s16 }
  0x15   :  { %p2737_p9 = scmp.lt.u32.totalorder %s2733_s19, %s3286_s5 }
  0x17   :  { %p2739_p10 = pnand %p2737_p9, %p2734_p8 }
  0x19   :  { %2742 = shalt.err (!%p2739_p10)
}
  0x1a   :  { %s2743_s24 = scalar_lea.vmem %s41_s16, 512  ;;  %p2748_p12 = scmp.lt.s32.totalorder %s41_s16, %s41_s16 }
  0x1b   :  { %p2744_p11 = scmp.ne.s32.totalorder %s41_s16, %s2743_s24  ;;  %p2749_p13 = scmp.lt.s32.totalorder %s2743_s24, %s2743_s24 }
  0x1d   :  { %p2750_p0 = por %p2749_p13, %p2748_p12 }
  0x1f   :  { %p2751_p1 = pnand %p2750_p0, %p2744_p11 }
  0x21   :  { %2754 = shalt.err (!%p2751_p1)
}
  0x22   :  { %46 = dma.hbm_to_vmem [thread:$0]  %s3286_s5, 512, %s41_s16, [#allocation6], %s2784_s11, %s2784_s11, %s2785_s12  }
  0x23   :  { %2777 = dma.done.wait [#allocation3], 512  }
  0x24   :  { %2778 = vsyncadd [#allocation3], 4294966784 }
  0x25   :  { %2779 = dma.done.wait [#allocation6], 512  }
  0x26   :  { %2780 = vsyncadd [#allocation6], 4294966784  ;;  %vm69_vm0 = vcmask 261120   ;;  %v58_v0 = vld [vmem:[%s3283_s2] sm:$0xff]  ;;  %v59_v1 = vld [vmem:[%s3283_s2 + $0x8] sm:$0xff]  ;;  %s2788_s18 = smov 120   ;;  %v176_v17 = vlaneseq }
  0x27   :  { %v60_v2 = vld [vmem:[%s3283_s2 + $0x10] sm:$0xff]  ;;  %v2591_v3 = vpack.c.bf16 %v59_v1, %v58_v0  ;;  %v61_v4 = vld [vmem:[%s3283_s2 + $0x18] sm:$0xff]  ;;  %v55_v5 = vld [vmem:[%s3281_s0] sm:$0xff]  ;;  %s2787_s2 = smov 112   ;;  %s2789_s19 = smov 104   ;;  %vm1037_vm1 = vcmask 64512  }
  0x28   :  { %v2595_v6 = vpack.c.bf16 %v61_v4, %v60_v2  ;;  %2510 = vmatprep.mubr.msk.f32.mxu0 %vm69_vm0, %v55_v5  ;;  %v56_v7 = vld [vmem:[%s3281_s0 + $0x8] sm:$0xff]  ;;  %v2405_v8 = vld [vmem:[%s3284_s3] ss:$0 sm:$0xff]  ;;  %s2790_s20 = smov 96   ;;  %v2791_v15 = vmov 1983009808   ;;  %vm3017_vm2 = vmpackc.low %vm1037_vm1, %vm1037_vm1 }
  0x29   :  { %2592 = vmatprep.subr.bf16.mxu0 %v2591_v3  ;;  %v174_v16 = vunpack.c.l.s4 %v2791_v15  ;;  %v2792_v20 = vmov 1934713408   ;;  %v2906_v23 = vshrl.u32 %v176_v17, 7  ;;  %s2793_s3 = smov 64   ;;  %vm1386_vm3 = vcmask 130048   ;;  %s2795_s4 = smov 24  }
  0x2a   :  { %2594 = vmatpush3.bf16.msra.mxu0 %v2591_v3  ;;  %v206_v21 = vunpack.c.l.s4 %v2792_v20  ;;  %vm2123_vm4 = vcmask 195584  }
  0x2b   :  { %2596 = vmatprep.subr.bf16.mxu0 %v2595_v6  ;;  %v175_v22 = vunpack.c.0.s8 %v174_v16 }
  0x2c   :  { %v207_v26 = vunpack.c.0.s8 %v206_v21 }
  0x2d   :  { %v2918_v29 = vsub.s32 %v175_v22, %v2906_v23 }
  0x2e   :  { %2598 = vmatpush3.bf16.msra.mxu0 %v2595_v6  ;;  %v2931_v36 = vsub.s32 %v207_v26, %v2906_v23 }
  0x31   :  { %2511 = vmatmul.mubr.msk.f32.vlgmr.msra.gmra.mrb[0].mxu0 %vm69_vm0, %v56_v7 }
 0x104   :  { %v2512_v9 = vpop.f32.mrb[0].mxu0 }
 0x105   :  { %v2890_v10 = vadd.f32 %v2512_v9, %v2405_v8  ;;  %v142_v11 = vpop.f32.mrb[1].mxu0 }
 0x106   :  { %v143_v12 = vadd.f32 %v2405_v8, %v142_v11 }
 0x107   :  { %161 = vrot.lane.b32.xlu1 %v2890_v10, %s2787_s2  ;;  %155 = vrot.lane.b32.xlu0 %v2890_v10, %s2788_s18 }
 0x10b   :  { %159 = vrot.lane.b32.xlu1 %v143_v12, %s2787_s2  ;;  %153 = vrot.lane.b32.xlu0 %v143_v12, %s2788_s18 }
 0x10f   :  { %167 = vrot.lane.b32.xlu1 %v2890_v10, %s2789_s19  ;;  %165 = vrot.lane.b32.xlu0 %v143_v12, %s2789_s19 }
 0x113   :  { %445 = vrot.lane.b32.xlu1 %v2890_v10, %s2790_s20  ;;  %443 = vrot.lane.b32.xlu0 %v143_v12, %s2790_s20 }
 0x179   :  { %v2898_v13 = vpop.permute.xlu1 %161  ;;  %v2900_v14 = vpop.permute.xlu0 %155 }
 0x17a   :  { %449 = vrot.lane.b32.xlu1 %v2900_v14, %s2790_s20  ;;  %v239_v5 = vcombine.low %v2890_v10, %v2898_v13  ;;  %v240_v7 = vcombine.high %v2890_v10, %v2898_v13 }
 0x17d   :  { %v2904_v18 = vpop.permute.xlu1 %159  ;;  %v154_v19 = vpop.permute.xlu0 %153 }
 0x17e   :  { %453 = vrot.lane.b32.xlu1 %v2898_v13, %s2790_s20  ;;  %447 = vrot.lane.b32.xlu0 %v154_v19, %s2790_s20  ;;  %v171_v24 = vcombine.low %v143_v12, %v2904_v18  ;;  %v172_v25 = vcombine.high %v143_v12, %v2904_v18 }
 0x180   :  { %v179_v34 = vrot.slane %v171_v24, %v2918_v29  ;;  %v186_v35 = vrot.slane %v172_v25, %v2918_v29 }
 0x181   :  { %v2913_v27 = vpop.permute.xlu1 %167  ;;  %v2915_v28 = vpop.permute.xlu0 %165 }
 0x182   :  { %v187_v30 = vcombine.low %v154_v19, %v2915_v28  ;;  %v188_v31 = vcombine.high %v154_v19, %v2915_v28  ;;  %457 = vrot.lane.b32.xlu1 %v2913_v27, %s2790_s20  ;;  %451 = vrot.lane.b32.xlu0 %v2904_v18, %s2790_s20  ;;  %v255_v2 = vcombine.low %v2900_v14, %v2913_v27 }
 0x183   :  { %v256_v6 = vcombine.high %v2900_v14, %v2913_v27 }
 0x184   :  { %v195_v32 = vrot.slane %v187_v30, %v2918_v29  ;;  %v202_v33 = vrot.slane %v188_v31, %v2918_v29  ;;  %v263_v8 = vrot.slane %v255_v2, %v2918_v29 }
 0x185   :  { %v446_v1 = vpop.permute.xlu1 %445  ;;  %v444_v3 = vpop.permute.xlu0 %443  ;;  %v270_v15 = vrot.slane %v256_v6, %v2918_v29 }
 0x186   :  { %739 = vrot.lane.b32.xlu1 %v143_v12, %s2793_s3  ;;  %v203_v37 = vcombine.low %v179_v34, %v195_v32  ;;  %v204_v38 = vcombine.high %v179_v34, %v195_v32  ;;  %v219_v39 = vcombine.low %v186_v35, %v202_v33  ;;  %v220_v40 = vcombine.high %v186_v35, %v202_v33 }
 0x187   :  { %455 = vrot.lane.b32.xlu0 %v2915_v28, %s2790_s20  ;;  %v247_v12 = vrot.slane %v239_v5, %v2918_v29 }
 0x188   :  { %v211_v41 = vrot.slane %v203_v37, %v2931_v36  ;;  %v218_v42 = vrot.slane %v204_v38, %v2931_v36  ;;  %v227_v43 = vrot.slane %v219_v39, %v2931_v36  ;;  %v234_v44 = vrot.slane %v220_v40, %v2931_v36 }
 0x189   :  { %v271_v20 = vcombine.low %v247_v12, %v263_v8  ;;  %v272_v21 = vcombine.high %v247_v12, %v263_v8 }
 0x18a   :  { %745 = vrot.lane.b32.xlu1 %v2900_v14, %s2793_s3  ;;  %v307_v45 = vcombine.low %v211_v41, %v218_v42  ;;  %v2408_v46 = vcombine.high %v211_v41, %v218_v42  ;;  %v323_v47 = vcombine.low %v227_v43, %v234_v44  ;;  %v2409_v48 = vcombine.high %v227_v43, %v234_v44 }
 0x18b   :  { %741 = vrot.lane.b32.xlu0 %v2890_v10, %s2793_s3  ;;  %v279_v34 = vrot.slane %v271_v20, %v2931_v36  ;;  %v286_v35 = vrot.slane %v272_v21, %v2931_v36 }
 0x18c   :  { %v314_v49 = vrot.slane %v307_v45, %v2918_v29  ;;  %v322_v50 = vrot.slane %v2408_v46, %v2918_v29  ;;  %v330_v51 = vrot.slane %v323_v47, %v2918_v29  ;;  %v338_v52 = vrot.slane %v2409_v48, %v2918_v29 }
 0x18e   :  { %743 = vrot.lane.b32.xlu1 %v154_v19, %s2793_s3  ;;  %v339_v53 = vcombine.low %v314_v49, %v322_v50  ;;  %v340_v54 = vcombine.high %v314_v49, %v322_v50  ;;  %v355_v55 = vcombine.low %v330_v51, %v338_v52  ;;  %v356_v56 = vcombine.high %v330_v51, %v338_v52 }
 0x18f   :  { %v254_v19 = vrot.slane %v240_v7, %v2918_v29 }
 0x190   :  { %v347_v57 = vrot.slane %v339_v53, %v2931_v36  ;;  %v363_v58 = vrot.slane %v355_v55, %v2931_v36  ;;  %v2952_v59 = vrot.slane %v340_v54, %v2931_v36  ;;  %v2955_v60 = vrot.slane %v356_v56, %v2931_v36 }
 0x191   :  { %v287_v26 = vcombine.low %v254_v19, %v270_v15  ;;  %v288_v10 = vcombine.high %v254_v19, %v270_v15  ;;  %v375_v15 = vcombine.low %v279_v34, %v286_v35 }
 0x192   :  { %v371_v61 = vcombine.low %v347_v57, %v363_v58  ;;  %v372_v62 = vcombine.high %v347_v57, %v363_v58  ;;  %v373_v63 = vcombine.low %v2952_v59, %v2955_v60  ;;  %v374_v0 = vcombine.high %v2952_v59, %v2955_v60  ;;  %v1035_v59 = vld [vmem:[%s3282_s1] sm:$0xff] }
 0x193   :  { %v295_v44 = vrot.slane %v287_v26, %v2931_v36  ;;  %v302_v45 = vrot.slane %v288_v10, %v2931_v36 }
 0x194   :  { %2517 = vmatprep.mubr.msk.f32.mxu1 %vm1037_vm1, %v371_v61  ;;  %2524 = vmatprep.mubr.msk.f32.mxu0 %vm1037_vm1, %v372_v62 }
 0x1ec   :  { %v450_v4 = vpop.permute.xlu1 %449 }
 0x1f0   :  { %v454_v9 = vpop.permute.xlu1 %453  ;;  %v448_v11 = vpop.permute.xlu0 %447 }
 0x1f1   :  { %v535_v16 = vcombine.low %v446_v1, %v454_v9  ;;  %v536_v17 = vcombine.high %v446_v1, %v454_v9 }
 0x1f3   :  { %v543_v30 = vrot.slane %v535_v16, %v2918_v29  ;;  %v550_v31 = vrot.slane %v536_v17, %v2918_v29  ;;  %v2410_v16 = vcombine.high %v279_v34, %v286_v35 }
 0x1f4   :  { %v458_v22 = vpop.permute.xlu1 %457  ;;  %v452_v25 = vpop.permute.xlu0 %451 }
 0x1f5   :  { %v551_v24 = vcombine.low %v450_v4, %v458_v22  ;;  %v552_v14 = vcombine.high %v450_v4, %v458_v22  ;;  %v467_v37 = vcombine.low %v444_v3, %v452_v25  ;;  %v468_v38 = vcombine.high %v444_v3, %v452_v25 }
 0x1f6   :  { %v2411_v25 = vcombine.high %v295_v44, %v302_v45 }
 0x1f7   :  { %v559_v32 = vrot.slane %v551_v24, %v2918_v29  ;;  %v566_v33 = vrot.slane %v552_v14, %v2918_v29  ;;  %v475_v52 = vrot.slane %v467_v37, %v2918_v29  ;;  %v482_v53 = vrot.slane %v468_v38, %v2918_v29 }
 0x1f8   :  { %v391_v14 = vcombine.low %v295_v44, %v302_v45  ;;  %v382_v37 = vrot.slane %v375_v15, %v2918_v29  ;;  %v390_v38 = vrot.slane %v2410_v16, %v2918_v29 }
 0x1f9   :  { %v567_v39 = vcombine.low %v543_v30, %v559_v32  ;;  %v568_v40 = vcombine.high %v543_v30, %v559_v32  ;;  %v583_v41 = vcombine.low %v550_v31, %v566_v33  ;;  %v584_v42 = vcombine.high %v550_v31, %v566_v33  ;;  %v456_v43 = vpop.permute.xlu0 %455 }
 0x1fa   :  { %v483_v46 = vcombine.low %v448_v11, %v456_v43  ;;  %v484_v47 = vcombine.high %v448_v11, %v456_v43  ;;  %v398_v45 = vrot.slane %v391_v14, %v2918_v29 }
 0x1fb   :  { %v575_v48 = vrot.slane %v567_v39, %v2931_v36  ;;  %v582_v49 = vrot.slane %v568_v40, %v2931_v36  ;;  %v591_v50 = vrot.slane %v583_v41, %v2931_v36  ;;  %v598_v51 = vrot.slane %v584_v42, %v2931_v36 }
 0x1fc   :  { %v491_v54 = vrot.slane %v483_v46, %v2918_v29  ;;  %v498_v55 = vrot.slane %v484_v47, %v2918_v29  ;;  %v406_v46 = vrot.slane %v2411_v25, %v2918_v29 }
 0x1fd   :  { %v671_v56 = vcombine.low %v575_v48, %v582_v49  ;;  %v2414_v57 = vcombine.high %v575_v48, %v582_v49  ;;  %v687_v58 = vcombine.low %v591_v50, %v598_v51  ;;  %v2415_v61 = vcombine.high %v591_v50, %v598_v51 }
 0x1fe   :  { %v499_v62 = vcombine.low %v475_v52, %v491_v54  ;;  %v500_v1 = vcombine.high %v475_v52, %v491_v54  ;;  %v515_v2 = vcombine.low %v482_v53, %v498_v55  ;;  %v516_v3 = vcombine.high %v482_v53, %v498_v55 }
 0x1ff   :  { %v678_v4 = vrot.slane %v671_v56, %v2918_v29  ;;  %v686_v5 = vrot.slane %v2414_v57, %v2918_v29  ;;  %v694_v6 = vrot.slane %v687_v58, %v2918_v29  ;;  %v702_v7 = vrot.slane %v2415_v61, %v2918_v29 }
 0x200   :  { %v507_v8 = vrot.slane %v499_v62, %v2931_v36  ;;  %v514_v9 = vrot.slane %v500_v1, %v2931_v36  ;;  %v523_v11 = vrot.slane %v515_v2, %v2931_v36  ;;  %v530_v12 = vrot.slane %v516_v3, %v2931_v36 }
 0x201   :  { %v703_v17 = vcombine.low %v678_v4, %v686_v5  ;;  %v719_v19 = vcombine.low %v694_v6, %v702_v7  ;;  %v704_v26 = vcombine.high %v678_v4, %v686_v5  ;;  %v720_v10 = vcombine.high %v694_v6, %v702_v7 }
 0x202   :  { %v603_v20 = vcombine.low %v507_v8, %v514_v9  ;;  %v2412_v21 = vcombine.high %v507_v8, %v514_v9  ;;  %v619_v22 = vcombine.low %v523_v11, %v530_v12  ;;  %v2413_v24 = vcombine.high %v523_v11, %v530_v12 }
 0x203   :  { %v711_v34 = vrot.slane %v703_v17, %v2931_v36  ;;  %v727_v35 = vrot.slane %v719_v19, %v2931_v36  ;;  %v718_v43 = vrot.slane %v704_v26, %v2931_v36  ;;  %v734_v44 = vrot.slane %v720_v10, %v2931_v36 }
 0x204   :  { %v610_v30 = vrot.slane %v603_v20, %v2918_v29  ;;  %v618_v31 = vrot.slane %v2412_v21, %v2918_v29  ;;  %v626_v32 = vrot.slane %v619_v22, %v2918_v29  ;;  %v634_v33 = vrot.slane %v2413_v24, %v2918_v29 }
 0x205   :  { %v735_v51 = vcombine.low %v711_v34, %v727_v35  ;;  %v736_v52 = vcombine.high %v711_v34, %v727_v35  ;;  %v407_v58 = vcombine.low %v382_v37, %v390_v38  ;;  %v423_v61 = vcombine.low %v398_v45, %v406_v46 }
 0x206   :  { %v635_v39 = vcombine.low %v610_v30, %v618_v31  ;;  %v636_v40 = vcombine.high %v610_v30, %v618_v31  ;;  %v651_v41 = vcombine.low %v626_v32, %v634_v33  ;;  %v652_v42 = vcombine.high %v626_v32, %v634_v33 }
 0x207   :  { %v737_v2 = vcombine.low %v718_v43, %v734_v44  ;;  %v738_v3 = vcombine.high %v718_v43, %v734_v44  ;;  %v415_v6 = vrot.slane %v407_v58, %v2931_v36  ;;  %v431_v7 = vrot.slane %v423_v61, %v2931_v36 }
 0x208   :  { %v643_v47 = vrot.slane %v635_v39, %v2931_v36  ;;  %v659_v48 = vrot.slane %v651_v41, %v2931_v36  ;;  %v650_v49 = vrot.slane %v636_v40, %v2931_v36  ;;  %v666_v50 = vrot.slane %v652_v42, %v2931_v36 }
 0x209   :  { %v408_v8 = vcombine.high %v382_v37, %v390_v38  ;;  %v424_v9 = vcombine.high %v398_v45, %v406_v46  ;;  %v439_v11 = vcombine.low %v415_v6, %v431_v7  ;;  %v440_v12 = vcombine.high %v415_v6, %v431_v7  ;;  %v3071_v45 = vpop.permute.xlu1 %739 }
 0x20a   :  { %v667_v53 = vcombine.low %v643_v47, %v659_v48  ;;  %v668_v54 = vcombine.high %v643_v47, %v659_v48  ;;  %v669_v55 = vcombine.low %v650_v49, %v666_v50  ;;  %v670_v56 = vcombine.high %v650_v49, %v666_v50  ;;  %v3075_v47 = vpop.permute.xlu0 %741 }
 0x20b   :  { %v422_v15 = vrot.slane %v408_v8, %v2931_v36  ;;  %v438_v16 = vrot.slane %v424_v9, %v2931_v36 }
 0x20c   :  { %v2599_v62 = vpack.c.bf16 %v735_v51, %v667_v53  ;;  %v2605_v1 = vpack.c.bf16 %v736_v52, %v668_v54  ;;  %v2611_v4 = vpack.c.bf16 %v737_v2, %v669_v55  ;;  %v2617_v5 = vpack.c.bf16 %v738_v3, %v670_v56 }
 0x20d   :  { %v441_v17 = vcombine.low %v422_v15, %v438_v16  ;;  %v442_v19 = vcombine.high %v422_v15, %v438_v16  ;;  %v3073_v46 = vpop.permute.xlu1 %745 }
 0x20e   :  { %2601 = vmatprep.subr.msk.bf16.mxu1 %vm3017_vm2, %v2599_v62  ;;  %2607 = vmatprep.subr.msk.bf16.mxu0 %vm3017_vm2, %v2605_v1 }
 0x20f   :  { %2604 = vmatpush3.bf16.xpose.msk.msra.mxu1 %vm3017_vm2, %v2599_v62  ;;  %2610 = vmatpush3.bf16.xpose.msk.msra.mxu0 %vm3017_vm2, %v2605_v1 }
 0x210   :  { %2613 = vmatprep.subr.msk.bf16.mxu1 %vm3017_vm2, %v2611_v4  ;;  %2619 = vmatprep.subr.msk.bf16.mxu0 %vm3017_vm2, %v2617_v5 }
 0x211   :  { %v3077_v48 = vpop.permute.xlu1 %743 }
 0x216   :  { %2518 = vmatmul.mubr.msk.f32.vlgmr.msra.gmra.mrb[0].mxu1 %vm1037_vm1, %v439_v11  ;;  %2525 = vmatmul.mubr.msk.f32.vlgmr.msra.gmra.mrb[2].mxu0 %vm1037_vm1, %v440_v12 }
 0x217   :  { %2616 = vmatpush3.bf16.xpose.msk.msra.mxu1 %vm3017_vm2, %v2611_v4  ;;  %2531 = vmatprep.mubr.msk.f32.mxu1 %vm1037_vm1, %v373_v63  ;;  %v1036_v63 = vld [vmem:[%s3282_s1 + $0x8] sm:$0xff]  ;;  %s2794_s1 = smov 16  }
 0x218   :  { %2622 = vmatpush3.bf16.xpose.msk.msra.mxu0 %vm3017_vm2, %v2617_v5  ;;  %2538 = vmatprep.mubr.msk.f32.mxu0 %vm1037_vm1, %v374_v0 }
 0x21e   :  { %2532 = vmatmul.mubr.msk.f32.vlgmr.msra.gmra.mrb[2].mxu1 %vm1037_vm1, %v441_v17 }
 0x21f   :  { %2539 = vmatmul.mubr.msk.f32.vlgmr.msra.gmra.mrb[4].mxu0 %vm1037_vm1, %v442_v19 }
 0x2e9   :  { %v2519_v20 = vpop.f32.mrb[0].mxu1  ;;  %v2526_v21 = vpop.f32.mrb[2].mxu0 }
 0x2ea   :  { %v1122_v60 = vadd.f32 %v2519_v20, %v1036_v63  ;;  %v1209_v0 = vadd.f32 %v2526_v21, %v1036_v63  ;;  %v1116_v22 = vpop.f32.mrb[1].mxu1  ;;  %v1203_v24 = vpop.f32.mrb[3].mxu0 }
 0x2eb   :  { %v1117_v14 = vadd.f32 %v1116_v22, %v1035_v59  ;;  %v1204_v10 = vadd.f32 %v1203_v24, %v1035_v59 }
 0x2ec   :  { %v1396_v25 = vsel %vm1386_vm3, %v1209_v0, -inf  ;;  %v1390_v26 = vsel %vm1386_vm3, %v1122_v60, -inf }
 0x2ed   :  { %1397 = vmax.xlane.f32.xlu0 %v1396_v25  ;;  %1391 = vmax.xlane.f32.xlu1 %v1390_v26  ;;  %v1387_v30 = vsel %vm1386_vm3, %v1117_v14, -inf  ;;  %v1393_v40 = vsel %vm1386_vm3, %v1204_v10, -inf }
 0x2f1   :  { %v2533_v31 = vpop.f32.mrb[2].mxu1  ;;  %1388 = vmax.xlane.f32.xlu0 %v1387_v30 }
 0x2f2   :  { %v1296_v32 = vadd.f32 %v2533_v31, %v1036_v63  ;;  %v2540_v33 = vpop.f32.mrb[4].mxu0  ;;  %v1290_v34 = vpop.f32.mrb[3].mxu1 }
 0x2f3   :  { %v1377_v35 = vpop.f32.mrb[5].mxu0  ;;  %v1383_v37 = vadd.f32 %v2540_v33, %v1036_v63  ;;  %v1291_v38 = vadd.f32 %v1290_v34, %v1035_v59 }
 0x2f4   :  { %v1402_v39 = vsel %vm1386_vm3, %v1296_v32, -inf  ;;  %v1378_v41 = vadd.f32 %v1377_v35, %v1035_v59 }
 0x2f5   :  { %1403 = vmax.xlane.f32.xlu1 %v1402_v39  ;;  %1394 = vmax.xlane.f32.xlu0 %v1393_v40  ;;  %v1399_v42 = vsel %vm1386_vm3, %v1291_v38, -inf  ;;  %v1408_v43 = vsel %vm1386_vm3, %v1383_v37, -inf }
 0x2f6   :  { %v1405_v44 = vsel %vm1386_vm3, %v1378_v41, -inf }
 0x2f9   :  { %1400 = vmax.xlane.f32.xlu1 %v1399_v42  ;;  %1409 = vmax.xlane.f32.xlu0 %v1408_v43 }
 0x2fd   :  { %1406 = vmax.xlane.f32.xlu0 %v1405_v44 }
 0x30a   :  { %749 = vrot.lane.b32.xlu1 %v2898_v13, %s2793_s3 }
 0x313   :  { %747 = vrot.lane.b32.xlu0 %v2904_v18, %s2793_s3 }
 0x37a   :  { %v1392_v49 = vpop.xlane.xlu1 %1391  ;;  %v1398_v50 = vpop.xlane.xlu0 %1397 }
 0x37b   :  { %v1412_v51 = vsub.f32 %v1122_v60, %v1392_v49  ;;  %v1414_v52 = vsub.f32 %v1209_v0, %v1398_v50 }
 0x37d   :  { %v1421_v53 = vmul.f32 1.442695, %v1412_v51  ;;  %v1425_v54 = vmul.f32 1.442695, %v1414_v52 }
 0x37e   :  { %v1389_v55 = vpop.xlane.xlu0 %1388 }
 0x37f   :  { %2669 = vpow2.f32 %v1421_v53  ;;  %v1411_v13 = vsub.f32 %v1117_v14, %v1389_v55 }
 0x380   :  { %2671 = vpow2.f32 %v1425_v54 }
 0x381   :  { %v1419_v56 = vmul.f32 1.442695, %v1411_v13 }
 0x382   :  { %v1404_v18 = vpop.xlane.xlu1 %1403  ;;  %v1395_v57 = vpop.xlane.xlu0 %1394 }
 0x383   :  { %2673 = vpow2.f32 %v1419_v56  ;;  %v1416_v58 = vsub.f32 %v1296_v32, %v1404_v18  ;;  %v1413_v61 = vsub.f32 %v1204_v10, %v1395_v57 }
 0x385   :  { %v1423_v62 = vmul.f32 1.442695, %v1413_v61  ;;  %v1429_v1 = vmul.f32 1.442695, %v1416_v58 }
 0x386   :  { %v1401_v2 = vpop.xlane.xlu1 %1400  ;;  %v1410_v3 = vpop.xlane.xlu0 %1409 }
 0x387   :  { %v1415_v4 = vsub.f32 %v1291_v38, %v1401_v2  ;;  %v1418_v5 = vsub.f32 %v1383_v37, %v1410_v3  ;;  %2675 = vpow2.f32 %v1423_v62 }
 0x388   :  { %2677 = vpow2.f32 %v1429_v1 }
 0x389   :  { %v3079_v6 = vpop.eup %2669  ;;  %v1433_v7 = vmul.f32 1.442695, %v1418_v5  ;;  %v1427_v8 = vmul.f32 1.442695, %v1415_v4 }
 0x38a   :  { %v1407_v9 = vpop.xlane.xlu0 %1406  ;;  %v1438_v11 = vsel %vm1386_vm3, %v3079_v6, 0.0  ;;  %v3083_v12 = vpop.eup %2671 }
 0x38b   :  { %v1417_v15 = vsub.f32 %v1378_v41, %v1407_v9  ;;  %1439 = vadd.xlane.f32.xlu0 %v1438_v11  ;;  %2679 = vpow2.f32 %v1433_v7  ;;  %v1444_v19 = vsel %vm1386_vm3, %v3083_v12, 0.0  ;;  %v750_v30 = vpop.permute.xlu1 %749 }
 0x38c   :  { %2681 = vpow2.f32 %v1427_v8  ;;  %v831_v41 = vcombine.low %v3075_v47, %v750_v30  ;;  %v832_v42 = vcombine.high %v3075_v47, %v750_v30 }
 0x38d   :  { %v2674_v16 = vpop.eup %2673  ;;  %v1431_v17 = vmul.f32 1.442695, %v1417_v15 }
 0x38e   :  { %v1435_v63 = vsel %vm1386_vm3, %v2674_v16, 0.0  ;;  %v748_v10 = vpop.permute.xlu0 %747  ;;  %v839_v54 = vrot.slane %v831_v41, %v2918_v29  ;;  %v846_v13 = vrot.slane %v832_v42, %v2918_v29 }
 0x38f   :  { %2683 = vpow2.f32 %v1431_v17  ;;  %1445 = vadd.xlane.f32.xlu0 %v1444_v19  ;;  %1436 = vadd.xlane.f32.xlu1 %v1435_v63  ;;  %v763_v55 = vcombine.low %v3071_v45, %v748_v10  ;;  %v764_v62 = vcombine.high %v3071_v45, %v748_v10 }
 0x391   :  { %v3088_v20 = vpop.eup %2675  ;;  %v771_v1 = vrot.slane %v763_v55, %v2918_v29 }
 0x392   :  { %v1441_v21 = vsel %vm1386_vm3, %v3088_v20, 0.0  ;;  %v3092_v59 = vpop.eup %2677 }
 0x393   :  { %1442 = vadd.xlane.f32.xlu1 %v1441_v21  ;;  %v1450_v0 = vsel %vm1386_vm3, %v3092_v59, 0.0  ;;  %v778_v21 = vrot.slane %v764_v62, %v2918_v29 }
 0x395   :  { %v3094_v60 = vpop.eup %2679 }
 0x396   :  { %v1456_v22 = vsel %vm1386_vm3, %v3094_v60, 0.0  ;;  %v3100_v24 = vpop.eup %2681 }
 0x397   :  { %1451 = vadd.xlane.f32.xlu1 %v1450_v0  ;;  %1457 = vadd.xlane.f32.xlu0 %v1456_v22  ;;  %v1447_v26 = vsel %vm1386_vm3, %v3100_v24, 0.0 }
 0x399   :  { %v3102_v14 = vpop.eup %2683 }
 0x39a   :  { %v1453_v25 = vsel %vm1386_vm3, %v3102_v14, 0.0 }
 0x39b   :  { %1448 = vadd.xlane.f32.xlu1 %v1447_v26  ;;  %1454 = vadd.xlane.f32.xlu0 %v1453_v25 }
 0x3ac   :  { %753 = vrot.lane.b32.xlu1 %v2913_v27, %s2793_s3 }
 0x3b1   :  { %751 = vrot.lane.b32.xlu0 %v2915_v28, %s2793_s3 }
 0x418   :  { %v3112_v31 = vpop.xlane.xlu0 %1439 }
 0x41c   :  { %v1437_v32 = vpop.xlane.xlu1 %1436  ;;  %v3114_v33 = vpop.xlane.xlu0 %1445 }
 0x41d   :  { %2685 = vrcp.f32 %v1437_v32 }
 0x420   :  { %v3116_v34 = vpop.xlane.xlu1 %1442 }
 0x424   :  { %v3118_v35 = vpop.xlane.xlu1 %1451  ;;  %v3120_v37 = vpop.xlane.xlu0 %1457 }
 0x427   :  { %v2686_v38 = vpop.eup %2685 }
 0x428   :  { %v1467_v39 = vmul.f32 %v2686_v38, %v1437_v32  ;;  %v1449_v27 = vpop.xlane.xlu1 %1448  ;;  %v3122_v40 = vpop.xlane.xlu0 %1454 }
 0x429   :  { %2687 = vrcp.f32 %v1449_v27 }
 0x42a   :  { %v1475_v28 = vsub.f32 2.0, %v1467_v39  ;;  %2689 = vrcp.f32 %v3112_v31 }
 0x42b   :  { %2691 = vrcp.f32 %v3118_v35 }
 0x42c   :  { %v1483_v43 = vmul.f32 %v2686_v38, %v1475_v28  ;;  %v754_v44 = vpop.permute.xlu1 %753  ;;  %v752_v49 = vpop.permute.xlu0 %751  ;;  %2693 = vrcp.f32 %v3116_v34 }
 0x42d   :  { %v847_v51 = vcombine.low %v3073_v46, %v754_v44  ;;  %v848_v52 = vcombine.high %v3073_v46, %v754_v44  ;;  %v779_v53 = vcombine.low %v3077_v48, %v752_v49  ;;  %v780_v61 = vcombine.high %v3077_v48, %v752_v49 }
 0x42e   :  { %v1491_v50 = vmul.f32 %v2674_v16, %v1483_v43  ;;  %2695 = vrcp.f32 %v3114_v33 }
 0x42f   :  { %v855_v47 = vrot.slane %v847_v51, %v2918_v29  ;;  %v862_v56 = vrot.slane %v848_v52, %v2918_v29  ;;  %v787_v46 = vrot.slane %v779_v53, %v2918_v29  ;;  %v794_v15 = vrot.slane %v780_v61, %v2918_v29 }
 0x430   :  { %2545 = vmatprep.mubr.msk.f32.mxu1 %vm1386_vm3, %v1491_v50  ;;  %2697 = vrcp.f32 %v3122_v40 }
 0x431   :  { %v863_v18 = vcombine.low %v839_v54, %v855_v47  ;;  %v864_v57 = vcombine.high %v839_v54, %v855_v47  ;;  %v879_v58 = vcombine.low %v846_v13, %v862_v56  ;;  %v880_v2 = vcombine.high %v846_v13, %v862_v56 }
 0x432   :  { %v795_v48 = vcombine.low %v771_v1, %v787_v46  ;;  %v796_v16 = vcombine.high %v771_v1, %v787_v46  ;;  %v811_v39 = vcombine.low %v778_v21, %v794_v15  ;;  %2699 = vrcp.f32 %v3120_v37 }
 0x433   :  { %v2688_v3 = vpop.eup %2687  ;;  %v871_v4 = vrot.slane %v863_v18, %v2931_v36  ;;  %v878_v5 = vrot.slane %v864_v57, %v2931_v36  ;;  %v887_v7 = vrot.slane %v879_v58, %v2931_v36  ;;  %v894_v9 = vrot.slane %v880_v2, %v2931_v36 }
 0x434   :  { %v1471_v8 = vmul.f32 %v2688_v3, %v1449_v27  ;;  %v803_v30 = vrot.slane %v795_v48, %v2931_v36  ;;  %v2690_v32 = vpop.eup %2689  ;;  %v810_v38 = vrot.slane %v796_v16, %v2931_v36  ;;  %v812_v27 = vcombine.high %v778_v21, %v794_v15 }
 0x435   :  { %v967_v11 = vcombine.low %v871_v4, %v878_v5  ;;  %v2418_v45 = vcombine.high %v871_v4, %v878_v5  ;;  %v983_v19 = vcombine.low %v887_v7, %v894_v9  ;;  %v2419_v63 = vcombine.high %v887_v7, %v894_v9  ;;  %v2692_v28 = vpop.eup %2691 }
 0x436   :  { %v1479_v17 = vsub.f32 2.0, %v1471_v8  ;;  %v819_v44 = vrot.slane %v811_v39, %v2931_v36  ;;  %v826_v49 = vrot.slane %v812_v27, %v2931_v36  ;;  %v899_v50 = vcombine.low %v803_v30, %v810_v38  ;;  %v2694_v54 = vpop.eup %2693 }
 0x437   :  { %v974_v0 = vrot.slane %v967_v11, %v2918_v29  ;;  %v982_v22 = vrot.slane %v2418_v45, %v2918_v29  ;;  %v990_v26 = vrot.slane %v983_v19, %v2918_v29  ;;  %v998_v10 = vrot.slane %v2419_v63, %v2918_v29 }
 0x438   :  { %v1487_v25 = vmul.f32 %v2688_v3, %v1479_v17  ;;  %v1468_v52 = vmul.f32 %v2690_v32, %v3112_v31  ;;  %v2416_v53 = vcombine.high %v803_v30, %v810_v38  ;;  %v906_v55 = vrot.slane %v899_v50, %v2918_v29 }
 0x439   :  { %v999_v42 = vcombine.low %v974_v0, %v982_v22  ;;  %v1015_v43 = vcombine.low %v990_v26, %v998_v10  ;;  %v1000_v51 = vcombine.high %v974_v0, %v982_v22  ;;  %v915_v13 = vcombine.low %v819_v44, %v826_v49 }
 0x43a   :  { %v1495_v41 = vmul.f32 %v3100_v24, %v1487_v25  ;;  %v2417_v47 = vcombine.high %v819_v44, %v826_v49  ;;  %v1016_v56 = vcombine.high %v990_v26, %v998_v10  ;;  %v2696_v24 = vpop.eup %2695  ;;  %v1472_v46 = vmul.f32 %v2692_v28, %v3118_v35 }
 0x43b   :  { %v914_v18 = vrot.slane %v2416_v53, %v2918_v29  ;;  %v1007_v57 = vrot.slane %v999_v42, %v2931_v36  ;;  %v1023_v58 = vrot.slane %v1015_v43, %v2931_v36  ;;  %v922_v31 = vrot.slane %v915_v13, %v2918_v29  ;;  %v2698_v5 = vpop.eup %2697 }
 0x43c   :  { %2559 = vmatprep.mubr.msk.f32.mxu0 %vm1386_vm3, %v1495_v41  ;;  %v930_v61 = vrot.slane %v2417_v47, %v2918_v29  ;;  %v1014_v62 = vrot.slane %v1000_v51, %v2931_v36  ;;  %v1030_v1 = vrot.slane %v1016_v56, %v2931_v36  ;;  %v1469_v2 = vmul.f32 %v2694_v54, %v3116_v34  ;;  %v2700_v34 = vpop.eup %2699 }
 0x43d   :  { %v931_v3 = vcombine.low %v906_v55, %v914_v18  ;;  %v932_v4 = vcombine.high %v906_v55, %v914_v18  ;;  %v1476_v35 = vsub.f32 2.0, %v1468_v52  ;;  %v1470_v9 = vmul.f32 %v2696_v24, %v3114_v33 }
 0x43e   :  { %v947_v7 = vcombine.low %v922_v31, %v930_v61  ;;  %v948_v8 = vcombine.high %v922_v31, %v930_v61  ;;  %v1480_v48 = vsub.f32 2.0, %v1472_v46  ;;  %v1031_v16 = vcombine.low %v1007_v57, %v1023_v58 }
 0x43f   :  { %v939_v11 = vrot.slane %v931_v3, %v2931_v36  ;;  %v946_v45 = vrot.slane %v932_v4, %v2931_v36  ;;  %v1033_v19 = vcombine.low %v1014_v62, %v1030_v1  ;;  %v1477_v63 = vsub.f32 2.0, %v1469_v2 }
 0x440   :  { %v955_v15 = vrot.slane %v947_v7, %v2931_v36  ;;  %v962_v17 = vrot.slane %v948_v8, %v2931_v36  ;;  %v1473_v21 = vmul.f32 %v2698_v5, %v3122_v40  ;;  %v1032_v26 = vcombine.high %v1007_v57, %v1023_v58 }
 0x441   :  { %v1484_v33 = vmul.f32 %v2690_v32, %v1476_v35  ;;  %v1478_v10 = vsub.f32 2.0, %v1470_v9  ;;  %v1488_v30 = vmul.f32 %v2692_v28, %v1480_v48  ;;  %v1474_v38 = vmul.f32 %v2700_v34, %v3120_v37 }
 0x442   :  { %v963_v0 = vcombine.low %v939_v11, %v955_v15  ;;  %v965_v22 = vcombine.low %v946_v45, %v962_v17  ;;  %v964_v25 = vcombine.high %v939_v11, %v955_v15  ;;  %v1485_v41 = vmul.f32 %v2694_v54, %v1477_v63 }
 0x443   :  { %v1481_v42 = vsub.f32 2.0, %v1473_v21  ;;  %v966_v44 = vcombine.high %v946_v45, %v962_v17  ;;  %v1034_v49 = vcombine.high %v1014_v62, %v1030_v1  ;;  %v1492_v40 = vmul.f32 %v3079_v6, %v1484_v33 }
 0x444   :  { %v2623_v39 = vpack.c.bf16 %v1031_v16, %v963_v0  ;;  %v2631_v27 = vpack.c.bf16 %v1033_v19, %v965_v22  ;;  %v2627_v43 = vpack.c.bf16 %v1032_v26, %v964_v25  ;;  %v1486_v50 = vmul.f32 %v2696_v24, %v1478_v10 }
 0x445   :  { %v1496_v32 = vmul.f32 %v3092_v59, %v1488_v30  ;;  %v1482_v51 = vsub.f32 2.0, %v1474_v38  ;;  %v1493_v37 = vmul.f32 %v3088_v20, %v1485_v41  ;;  %v1489_v28 = vmul.f32 %v2698_v5, %v1481_v42 }
 0x446   :  { %2624 = vmatprep.subr.bf16.mxu1 %v2623_v39  ;;  %2632 = vmatprep.subr.bf16.mxu0 %v2631_v27  ;;  %v2635_v52 = vpack.c.bf16 %v1034_v49, %v966_v44  ;;  %v1494_v53 = vmul.f32 %v3083_v12, %v1486_v50 }
 0x447   :  { %2626 = vmatpush3.bf16.msra.mxu1 %v2623_v39  ;;  %2634 = vmatpush3.bf16.msra.mxu0 %v2631_v27  ;;  %v1490_v54 = vmul.f32 %v2700_v34, %v1482_v51  ;;  %v1497_v6 = vmul.f32 %v3102_v14, %v1489_v28 }
 0x448   :  { %2628 = vmatprep.subr.bf16.mxu1 %v2627_v43 }
 0x449   :  { %v1498_v20 = vmul.f32 %v3094_v60, %v1490_v54 }
 0x44a   :  { %2546 = vmatmul.mubr.msk.f32.vlgmr.msra.gmra.mrb[4].mxu1 %vm1386_vm3, %v1492_v40  ;;  %2560 = vmatmul.mubr.msk.f32.vlgmr.msra.gmra.mrb[6].mxu0 %vm1386_vm3, %v1496_v32 }
 0x44b   :  { %2630 = vmatpush3.bf16.msra.mxu1 %v2627_v43  ;;  %2552 = vmatprep.mubr.msk.f32.mxu1 %vm1386_vm3, %v1493_v37 }
 0x44c   :  { %2636 = vmatprep.subr.bf16.mxu1 %v2635_v52 }
 0x44e   :  { %2553 = vmatmul.mubr.msk.f32.vlgmr.msra.gmra.mrb[6].mxu1 %vm1386_vm3, %v1494_v53 }
 0x44f   :  { %2638 = vmatpush3.bf16.msra.mxu1 %v2635_v52  ;;  %2566 = vmatprep.mubr.msk.f32.mxu1 %vm1386_vm3, %v1497_v6 }
 0x452   :  { %2567 = vmatmul.mubr.msk.f32.vlgmr.msra.gmra.mrb[8].mxu1 %vm1386_vm3, %v1498_v20 }
 0x51d   :  { %v2547_v59 = vpop.f32.mrb[4].mxu1  ;;  %v2561_v55 = vpop.f32.mrb[6].mxu0 }
 0x51e   :  { %v1891_v13 = vcombine.low %v2547_v59, %v2561_v55  ;;  %v1892_v47 = vcombine.high %v2547_v59, %v2561_v55  ;;  %v1571_v56 = vpop.f32.mrb[5].mxu1  ;;  %v1733_v24 = vpop.f32.mrb[7].mxu0 }
 0x51f   :  { %v1823_v12 = vcombine.low %v1571_v56, %v1733_v24  ;;  %v1824_v46 = vcombine.high %v1571_v56, %v1733_v24 }
 0x520   :  { %v1899_v60 = vrot.slane %v1891_v13, %v2918_v29  ;;  %v1906_v2 = vrot.slane %v1892_v47, %v2918_v29 }
 0x521   :  { %v2554_v18 = vpop.f32.mrb[6].mxu1  ;;  %v1831_v5 = vrot.slane %v1823_v12, %v2918_v29  ;;  %v1838_v35 = vrot.slane %v1824_v46, %v2918_v29  ;;  %v2126_v46 = vld [vmem:[#allocation2] sm:$0xff] }
 0x522   :  { %v1652_v57 = vpop.f32.mrb[7].mxu1 }
 0x525   :  { %v2568_v14 = vpop.f32.mrb[8].mxu1 }
 0x526   :  { %v1907_v58 = vcombine.low %v2554_v18, %v2568_v14  ;;  %v1908_v31 = vcombine.high %v2554_v18, %v2568_v14  ;;  %v1814_v61 = vpop.f32.mrb[9].mxu1 }
 0x527   :  { %v1839_v62 = vcombine.low %v1652_v57, %v1814_v61  ;;  %v1840_v1 = vcombine.high %v1652_v57, %v1814_v61  ;;  %v2129_v61 = vld [vmem:[#allocation2 + $0x18] sm:$0xff] }
 0x528   :  { %v1915_v3 = vrot.slane %v1907_v58, %v2918_v29  ;;  %v1922_v4 = vrot.slane %v1908_v31, %v2918_v29  ;;  %v2127_v58 = vld [vmem:[#allocation2 + $0x8] sm:$0xff]  ;;  %v2128_v31 = vld [vmem:[#allocation2 + $0x10] sm:$0xff] }
 0x529   :  { %v1847_v7 = vrot.slane %v1839_v62, %v2918_v29  ;;  %v1854_v8 = vrot.slane %v1840_v1, %v2918_v29 }
 0x52a   :  { %v1923_v9 = vcombine.low %v1899_v60, %v1915_v3  ;;  %v1924_v48 = vcombine.high %v1899_v60, %v1915_v3  ;;  %v1939_v11 = vcombine.low %v1906_v2, %v1922_v4  ;;  %v1940_v45 = vcombine.high %v1906_v2, %v1922_v4 }
 0x52b   :  { %v1855_v15 = vcombine.low %v1831_v5, %v1847_v7  ;;  %v1856_v16 = vcombine.high %v1831_v5, %v1847_v7  ;;  %v1871_v17 = vcombine.low %v1838_v35, %v1854_v8  ;;  %v1872_v19 = vcombine.high %v1838_v35, %v1854_v8 }
 0x52c   :  { %v1931_v34 = vrot.slane %v1923_v9, %v2931_v36  ;;  %v1938_v63 = vrot.slane %v1924_v48, %v2931_v36  ;;  %v1947_v21 = vrot.slane %v1939_v11, %v2931_v36  ;;  %v1954_v0 = vrot.slane %v1940_v45, %v2931_v36 }
 0x52d   :  { %v1863_v22 = vrot.slane %v1855_v15, %v2931_v36  ;;  %v1870_v25 = vrot.slane %v1856_v16, %v2931_v36  ;;  %v1879_v26 = vrot.slane %v1871_v17, %v2931_v36  ;;  %v1886_v33 = vrot.slane %v1872_v19, %v2931_v36 }
 0x52e   :  { %v2027_v10 = vcombine.low %v1931_v34, %v1938_v63  ;;  %v2446_v30 = vcombine.high %v1931_v34, %v1938_v63  ;;  %v2043_v38 = vcombine.low %v1947_v21, %v1954_v0  ;;  %v2447_v39 = vcombine.high %v1947_v21, %v1954_v0 }
 0x52f   :  { %v1959_v27 = vcombine.low %v1863_v22, %v1870_v25  ;;  %v2444_v41 = vcombine.high %v1863_v22, %v1870_v25  ;;  %v1975_v42 = vcombine.low %v1879_v26, %v1886_v33  ;;  %v2445_v43 = vcombine.high %v1879_v26, %v1886_v33  ;;  %v3235_v22 = vld [vmem:[%s3287_s6] sm:$0x3f] }
 0x530   :  { %v2034_v44 = vrot.slane %v2027_v10, %v2918_v29  ;;  %v2042_v49 = vrot.slane %v2446_v30, %v2918_v29  ;;  %v2050_v40 = vrot.slane %v2043_v38, %v2918_v29  ;;  %v2058_v50 = vrot.slane %v2447_v39, %v2918_v29  ;;  %v2709_v38 = vld [vmem:[%s3281_s0 + $0x8] sm:$0xff] }
 0x531   :  { %v1966_v32 = vrot.slane %v1959_v27, %v2918_v29  ;;  %v1974_v51 = vrot.slane %v2444_v41, %v2918_v29  ;;  %v1982_v37 = vrot.slane %v1975_v42, %v2918_v29  ;;  %v1990_v28 = vrot.slane %v2445_v43, %v2918_v29  ;;  %v2710_v27 = vld [vmem:[%s3281_s0] sm:$0xff]  ;;  %s2796_s0 = smov [#allocation7]  }
 0x532   :  { %v2059_v52 = vcombine.low %v2034_v44, %v2042_v49  ;;  %v2075_v53 = vcombine.low %v2050_v40, %v2058_v50  ;;  %v2060_v54 = vcombine.high %v2034_v44, %v2042_v49  ;;  %v2076_v6 = vcombine.high %v2050_v40, %v2058_v50  ;;  %s2392_s6 = sshll.u32 %s2796_s0, 4  ;;  %s2393_s6 = int_to_ptr.vmem [resolvable:$true] %s2392_s6 }
 0x533   :  { %v1991_v20 = vcombine.low %v1966_v32, %v1974_v51  ;;  %v2007_v59 = vcombine.low %v1982_v37, %v1990_v28  ;;  %v1992_v55 = vcombine.high %v1966_v32, %v1974_v51  ;;  %v2008_v13 = vcombine.high %v1982_v37, %v1990_v28  ;;  %s2755_s8 = scalar_lea.vmem %s2393_s6, 256  ;;  %p2760_p3 = scmp.lt.s32.totalorder %s2393_s6, %s2393_s6 }
 0x534   :  { %v2067_v47 = vrot.slane %v2059_v52, %v2931_v36  ;;  %v2083_v56 = vrot.slane %v2075_v53, %v2931_v36  ;;  %v2074_v24 = vrot.slane %v2060_v54, %v2931_v36  ;;  %v2090_v12 = vrot.slane %v2076_v6, %v2931_v36  ;;  %v2256_v54 = vld [vmem:[#allocation5] sm:$0xff]  ;;  %v2257_v6 = vld [vmem:[#allocation5 + $0x8] sm:$0xff]  ;;  %p2756_p2 = scmp.ne.s32.totalorder %s2393_s6, %s2755_s8  ;;  %p2761_p4 = scmp.lt.s32.totalorder %s2755_s8, %s2755_s8 }
 0x535   :  { %v1999_v18 = vrot.slane %v1991_v20, %v2931_v36  ;;  %v2015_v29 = vrot.slane %v2007_v59, %v2931_v36  ;;  %v2006_v57 = vrot.slane %v1992_v55, %v2931_v36  ;;  %v2022_v14 = vrot.slane %v2008_v13, %v2931_v36  ;;  %v2258_v59 = vld [vmem:[#allocation5 + $0x10] sm:$0xff]  ;;  %v2259_v55 = vld [vmem:[#allocation5 + $0x18] sm:$0xff] }
 0x536   :  { %v2092_v62 = vcombine.high %v2067_v47, %v2083_v56  ;;  %v2091_v1 = vcombine.low %v2067_v47, %v2083_v56  ;;  %v2093_v60 = vcombine.low %v2074_v24, %v2090_v12  ;;  %v2094_v2 = vcombine.high %v2074_v24, %v2090_v12  ;;  %p2762_p5 = por %p2761_p4, %p2760_p3 }
 0x537   :  { %v2024_v3 = vcombine.high %v1999_v18, %v2015_v29  ;;  %v2023_v4 = vcombine.low %v1999_v18, %v2015_v29  ;;  %v2025_v5 = vcombine.low %v2006_v57, %v2022_v14  ;;  %v2026_v35 = vcombine.high %v2006_v57, %v2022_v14 }
 0x538   :  { %2099 = vrot.lane.b32.xlu1 %v2092_v62, %s2785_s12  ;;  %v2639_v7 = vpack.c.bf16 %v2127_v58, %v2126_v46  ;;  %v2643_v8 = vpack.c.bf16 %v2129_v61, %v2128_v31  ;;  %v2132_v0 = vsub.s32 0, %v2906_v23  ;;  %v2647_v20 = vpack.c.bf16 %v2257_v6, %v2256_v54  ;;  %p2763_p6 = pnand %p2762_p5, %p2756_p2 }
 0x539   :  { %2097 = vrot.lane.b32.xlu0 %v2024_v3, %s2785_s12  ;;  %v2651_v13 = vpack.c.bf16 %v2259_v55, %v2258_v59  ;;  %v2246_v29 = vsub.s32 1, %v2906_v23  ;;  %v2252_v57 = vsub.s32 2, %v2906_v23 }
 0x53a   :  { %2640 = vmatprep.subr.bf16.mxu0 %v2639_v7  ;;  %v2133_v25 = vrot.slane %v3235_v22, %v2132_v0  ;;  %2648 = vmatprep.subr.bf16.mxu1 %v2647_v20 }
 0x53b   :  { %2642 = vmatpush3.bf16.msra.mxu0 %v2639_v7  ;;  %2650 = vmatpush3.bf16.msra.mxu1 %v2647_v20  ;;  %v2247_v14 = vrot.slane %v3235_v22, %v2246_v29  ;;  %v2253_v61 = vrot.slane %v3235_v22, %v2252_v57 }
 0x53c   :  { %2107 = vrot.lane.b32.xlu1 %v2093_v60, %s2794_s1  ;;  %2644 = vmatprep.subr.bf16.mxu0 %v2643_v8 }
 0x53d   :  { %2105 = vrot.lane.b32.xlu0 %v2025_v5, %s2794_s1  ;;  %2652 = vmatprep.subr.bf16.mxu1 %v2651_v13  ;;  %v2262_v5 = vsub.s32 3, %v2906_v23 }
 0x53f   :  { %2646 = vmatpush3.bf16.msra.mxu0 %v2643_v8  ;;  %2654 = vmatpush3.bf16.msra.mxu1 %v2651_v13 }
 0x540   :  { %2115 = vrot.lane.b32.xlu1 %v2094_v2, %s2795_s4 }
 0x541   :  { %2113 = vrot.lane.b32.xlu0 %v2026_v35, %s2795_s4  ;;  %v2263_v35 = vrot.slane %v3235_v22, %v2262_v5 }
 0x5aa   :  { %v2100_v36 = vpop.permute.xlu1 %2099 }
 0x5ab   :  { %v2098_v9 = vpop.permute.xlu0 %2097  ;;  %v2120_v16 = vsel %vm1037_vm1, %v2091_v1, %v2100_v36 }
 0x5ac   :  { %v2119_v45 = vsel %vm1037_vm1, %v2023_v4, %v2098_v9 }
 0x5ae   :  { %v2108_v48 = vpop.permute.xlu1 %2107 }
 0x5af   :  { %v2106_v11 = vpop.permute.xlu0 %2105  ;;  %v2122_v34 = vsel %vm1386_vm3, %v2120_v16, %v2108_v48 }
 0x5b0   :  { %v2121_v17 = vsel %vm1386_vm3, %v2119_v45, %v2106_v11 }
 0x5b2   :  { %v2116_v15 = vpop.permute.xlu1 %2115 }
 0x5b3   :  { %v2114_v19 = vpop.permute.xlu0 %2113  ;;  %v2125_v21 = vsel %vm2123_vm4, %v2122_v34, %v2116_v15 }
 0x5b4   :  { %v2124_v63 = vsel %vm2123_vm4, %v2121_v17, %v2114_v19 }
 0x5b5   :  { %2577 = vmatprep.mubr.msk.f32.mxu0 %vm69_vm0, %v2124_v63 }
 0x5b6   :  { %2578 = vmatmul.mubr.msk.f32.vlgmr.msra.gmra.mrb[8].mxu0 %vm69_vm0, %v2125_v21 }
 0x689   :  { %v2579_v26 = vpop.f32.mrb[8].mxu0 }
 0x68a   :  { %v2212_v33 = vadd.f32 %v2579_v26, %v2133_v25  ;;  %v2206_v10 = vpop.f32.mrb[9].mxu0 }
 0x68b   :  { %v2207_v30 = vadd.f32 %v2206_v10, %v2133_v25 }
 0x68c   :  { %v2216_v39 = vadd.f32 %v2709_v38, %v2212_v33 }
 0x68d   :  { %v2215_v41 = vadd.f32 %v2710_v27, %v2207_v30 }
 0x68e   :  { %v2220_v42 = vsel %vm69_vm0, %v2216_v39, 0.0 }
 0x68f   :  { %2221 = vadd.xlane.f32.xlu1 %v2220_v42  ;;  %v2217_v43 = vsel %vm69_vm0, %v2215_v41, 0.0  ;;  %v2375_v42 = vsub.s32 4, %v2906_v23 }
 0x690   :  { %2218 = vadd.xlane.f32.xlu0 %v2217_v43  ;;  %v2381_v43 = vsub.s32 5, %v2906_v23 }
 0x71c   :  { %v2222_v44 = vpop.xlane.xlu1 %2221 }
 0x71d   :  { %v2225_v49 = vmul.f32 0.03125, %v2222_v44  ;;  %v2219_v40 = vpop.xlane.xlu0 %2218  ;;  %v2376_v44 = vrot.slane %v3235_v22, %v2375_v42 }
 0x71e   :  { %v2224_v50 = vmul.f32 0.03125, %v2219_v40 }
 0x71f   :  { %v2227_v32 = vsub.f32 %v2216_v39, %v2225_v49 }
 0x720   :  { %v2226_v51 = vsub.f32 %v2215_v41, %v2224_v50 }
 0x721   :  { %v2229_v52 = vmul.f32 %v2227_v32, %v2227_v32 }
 0x722   :  { %v2228_v37 = vmul.f32 %v2226_v51, %v2226_v51 }
 0x723   :  { %v2233_v53 = vsel %vm69_vm0, %v2229_v52, 0.0 }
 0x724   :  { %v2230_v28 = vsel %vm69_vm0, %v2228_v37, 0.0 }
 0x725   :  { %2231 = vadd.xlane.f32.xlu0 %v2230_v28 }
 0x729   :  { %2234 = vadd.xlane.f32.xlu0 %v2233_v53 }
 0x7b2   :  { %v2232_v47 = vpop.xlane.xlu0 %2231 }
 0x7b3   :  { %v2236_v56 = vmul.f32 0.03125, %v2232_v47 }
 0x7b5   :  { %v2238_v24 = vadd.f32 1e-05, %v2236_v56 }
 0x7b6   :  { %v2235_v12 = vpop.xlane.xlu0 %2234 }
 0x7b7   :  { %2701 = vrsqrt.f32 %v2238_v24  ;;  %v2237_v46 = vmul.f32 0.03125, %v2235_v12 }
 0x7b9   :  { %v2239_v18 = vadd.f32 1e-05, %v2237_v46 }
 0x7bb   :  { %2703 = vrsqrt.f32 %v2239_v18 }
 0x7c1   :  { %v2702_v58 = vpop.eup %2701 }
 0x7c2   :  { %v2242_v31 = vmul.f32 %v2702_v58, %v2226_v51 }
 0x7c4   :  { %v2248_v62 = vmul.f32 %v2247_v14, %v2242_v31 }
 0x7c5   :  { %v2704_v1 = vpop.eup %2703 }
 0x7c6   :  { %v2243_v60 = vmul.f32 %v2704_v1, %v2227_v32  ;;  %v2254_v2 = vadd.f32 %v2253_v61, %v2248_v62  ;;  %v2382_v32 = vrot.slane %v3235_v22, %v2381_v43 }
 0x7c8   :  { %v2249_v3 = vmul.f32 %v2247_v14, %v2243_v60  ;;  %2588 = vmatprep.mubr.msk.f32.mxu1 %vm69_vm0, %v2254_v2 }
 0x7ca   :  { %v2255_v4 = vadd.f32 %v2253_v61, %v2249_v3 }
 0x7cc   :  { %2589 = vmatmul.mubr.msk.f32.vlgmr.msra.gmra.mrb[10].mxu1 %vm69_vm0, %v2255_v4 }
 0x89f   :  { %v2590_v7 = vpop.f32.mrb[10].mxu1 }
 0x8a0   :  { %v2342_v8 = vadd.f32 %v2590_v7, %v2263_v35  ;;  %v2336_v36 = vpop.f32.mrb[11].mxu1 }
 0x8a1   :  { %v2337_v9 = vadd.f32 %v2336_v36, %v2263_v35 }
 0x8a2   :  { %v2346_v48 = vadd.f32 %v2342_v8, %v2255_v4 }
 0x8a3   :  { %v2345_v11 = vadd.f32 %v2337_v9, %v2254_v2 }
 0x8a4   :  { %v2350_v45 = vsel %vm69_vm0, %v2346_v48, 0.0 }
 0x8a5   :  { %2351 = vadd.xlane.f32.xlu0 %v2350_v45  ;;  %v2347_v15 = vsel %vm69_vm0, %v2345_v11, 0.0 }
 0x8a6   :  { %2348 = vadd.xlane.f32.xlu1 %v2347_v15 }
 0x932   :  { %v2352_v16 = vpop.xlane.xlu0 %2351 }
 0x933   :  { %v2354_v17 = vmul.f32 0.03125, %v2352_v16  ;;  %v2349_v19 = vpop.xlane.xlu1 %2348 }
 0x934   :  { %v2353_v34 = vmul.f32 0.03125, %v2349_v19 }
 0x935   :  { %v2356_v63 = vsub.f32 %v2346_v48, %v2354_v17 }
 0x936   :  { %v2355_v21 = vsub.f32 %v2345_v11, %v2353_v34 }
 0x937   :  { %v2358_v0 = vmul.f32 %v2356_v63, %v2356_v63 }
 0x938   :  { %v2357_v25 = vmul.f32 %v2355_v21, %v2355_v21 }
 0x939   :  { %v2362_v26 = vsel %vm69_vm0, %v2358_v0, 0.0 }
 0x93a   :  { %2363 = vadd.xlane.f32.xlu0 %v2362_v26  ;;  %v2359_v33 = vsel %vm69_vm0, %v2357_v25, 0.0 }
 0x93b   :  { %2360 = vadd.xlane.f32.xlu1 %v2359_v33 }
 0x9c7   :  { %v2364_v10 = vpop.xlane.xlu0 %2363 }
 0x9c8   :  { %v2366_v30 = vmul.f32 0.03125, %v2364_v10  ;;  %v2361_v38 = vpop.xlane.xlu1 %2360 }
 0x9c9   :  { %v2365_v39 = vmul.f32 0.03125, %v2361_v38 }
 0x9ca   :  { %v2368_v27 = vadd.f32 1e-05, %v2366_v30 }
 0x9cb   :  { %v2367_v41 = vadd.f32 1e-05, %v2365_v39 }
 0x9cc   :  { %2705 = vrsqrt.f32 %v2368_v27 }
 0x9cd   :  { %2707 = vrsqrt.f32 %v2367_v41 }
 0x9d6   :  { %v2706_v49 = vpop.eup %2705 }
 0x9d7   :  { %v2708_v40 = vpop.eup %2707  ;;  %v2372_v50 = vmul.f32 %v2706_v49, %v2356_v63 }
 0x9d8   :  { %v2371_v51 = vmul.f32 %v2708_v40, %v2355_v21 }
 0x9d9   :  { %v2378_v37 = vmul.f32 %v2376_v44, %v2372_v50 }
 0x9da   :  { %v2377_v28 = vmul.f32 %v2376_v44, %v2371_v51 }
 0x9db   :  { %v2384_v52 = vadd.f32 %v2382_v32, %v2378_v37 }
 0x9dc   :  { %v2383_v53 = vadd.f32 %v2382_v32, %v2377_v28 }
 0x9dd   :  { %2386 = vst.msk [vmem:[#allocation7 + $0x8] sm:$0xff] %vm69_vm0, %v2384_v52 }
 0x9de   :  { %2385 = vst.msk [vmem:[#allocation7] sm:$0xff] %vm69_vm0, %v2383_v53 }
 0x9df   :  { %2766 = shalt.err (!%p2763_p6)
}
 0x9e0   :  { %s2767_s10 = scalar_lea.hbm %s3288_s7, 256 }
 0x9e1   :  { %p2768_p7 = scmp.ne.s32.totalorder %s3288_s7, %s2767_s10  ;;  %p2771_p8 = scmp.lt.u32.totalorder %s2767_s10, %s3288_s7 }
 0x9e3   :  { %p2773_p9 = pnand %p2771_p8, %p2768_p7 }
 0x9e5   :  { %2776 = shalt.err (!%p2773_p9)
}
 0x9e6   :  { %2398 = dma.vmem_to_hbm [thread:$0]  %s2393_s6, 256, %s3288_s7, [#allocation4], %s2784_s11, %s2784_s11, %s2785_s12  }
 0x9e7   :  { %2781 = dma.done.wait [#allocation4], 256  }
 0x9e8   :  { %2782 = vsyncadd [#allocation4], 4294967040 }
 0x9e9   :  { %2402 = vsyncpa [#allocation3], 1 }
 0x9ea   :  { %2403 = vsyncpa [#allocation6], 1 }
 0x9eb   :  { %2404 = vsyncpa [#allocation4], 1 }

</bundles_post_ra>
